<compile_context>
chip_gen: v7x
topology: tpu7x:2x2x1
jax: 0.10.0
libtpu: 0.0.40
codegen_flags: <defaults>
</compile_context>

<pallas_src>
import jax
import jax.numpy as jnp
from jax.experimental import pallas as pl
from jax.experimental.pallas import tpu as pltpu


def _round_up(x, m):
    return (x + m - 1) // m * m


def _decoder_kernel(z_ref, c_ref, w1z_ref, w1c_ref, b1_ref, w2_ref, b2_ref,
                    o_ref):
    cd = w1z_ref.dtype                        # compute dtype (bf16)
    # fc1 as a sum of two dots: cat([z, c]) @ w1 == z @ w1[:L] + c @ w1[L:]
    h = jnp.dot(z_ref[...].astype(cd), w1z_ref[...],
                preferred_element_type=jnp.float32)
    h = h + jnp.dot(c_ref[...].astype(cd), w1c_ref[...],
                    preferred_element_type=jnp.float32)
    h = jnp.maximum(h + b1_ref[...], 0.0)     # f32 bias add + ReLU
    # fc2 (no activation, matches the PyTorch forward), f32 accumulation,
    # single cast at the final store.
    o = jnp.dot(h.astype(w2_ref.dtype), w2_ref[...],
                preferred_element_type=jnp.float32) + b2_ref[...]
    o_ref[...] = o.astype(o_ref.dtype)


def decoder_forward(z, class_labels, params, *, batch_tile=2048,
                    compute_dtype=jnp.bfloat16):
    """Pallas implementation of Decoder.forward (concat -> fc1 -> ReLU -> fc2)."""
    w1, b1, w2, b2 = params          # weights pre-transposed: (fan_in, fan_out)
    B, latent_dim = z.shape
    num_classes = class_labels.shape[-1]
    hid = w1.shape[1]
    out_dim = w2.shape[1]
    out_dtype = z.dtype

    # One-time tiny weight prep (no B-scaled wrapper passes over activations).
    w1z = w1[:latent_dim].astype(compute_dtype)
    w1c = w1[latent_dim:].astype(compute_dtype)
    w2c = w2.astype(compute_dtype)
    b1r = b1.astype(jnp.float32).reshape(1, hid)    # f32 add into f32 acc
    b2r = b2.astype(jnp.float32).reshape(1, out_dim)

    # Generation-aware VMEM budget (~75% of physical: v7x 64 MiB, v5e/v6e 128).
    try:
        vmem_cap = int(pltpu.get_tpu_info().vmem_capacity_bytes)
    except Exception:
        vmem_cap = 64 << 20
    vmem_budget = (vmem_cap * 3) // 4

    # Per-row VMEM footprint: double-buffered z/labels/out tiles plus bf16/f32
    # intermediates; weights & biases are resident (Buffered(1), counted once).
    isz = jnp.dtype(compute_dtype).itemsize
    in_row = (latent_dim * jnp.dtype(z.dtype).itemsize
              + num_classes * jnp.dtype(class_labels.dtype).itemsize)
    out_row = out_dim * jnp.dtype(out_dtype).itemsize
    per_row = (2 * (in_row + out_row)
               + (latent_dim + num_classes + hid) * isz
               + (hid + out_dim) * 4)
    fixed = (w1z.size + w1c.size + w2c.size) * isz + (hid + out_dim) * 4
    # TODO(synk): if `fixed` grows past ~1/3 of vmem_budget (very large
    # hidden/output dims), switch fc2 to K/N tiling with an f32 accumulator
    # scratch instead of keeping w2 fully resident.

    row_align = 8                              # activations stay f32 in HBM
    max_rows = max((vmem_budget - fixed) // per_row, row_align)
    tile_cap = max((min(batch_tile, max_rows) // row_align) * row_align,
                   row_align)

    if B <= tile_cap:
        if B >= 2 * row_align:
            # Split into >=2 grid steps so the parallel axis can use both v7x
            # TensorCores (harmless on single-TC v5e/v6e).
            tile_b = _round_up(pl.cdiv(B, 2), row_align)
        else:
            tile_b = B                         # single full-extent block
    else:
        tile_b = tile_cap
    grid_b = pl.cdiv(B, tile_b)                # edge block handled by Pallas

    est = fixed + tile_b * per_row
    vmem_limit = int(min(vmem_budget, max(2 * est, 16 << 20)))

    const = lambda i: (0, 0)
    resident = pl.Buffered(1)                  # constant-index operands
    out = pl.pallas_call(
        _decoder_kernel,
        out_shape=jax.ShapeDtypeStruct((B, out_dim), out_dtype),
        grid_spec=pltpu.PrefetchScalarGridSpec(
            num_scalar_prefetch=0,
            grid=(grid_b,),
            in_specs=[
                pl.BlockSpec((tile_b, latent_dim), lambda i: (i, 0)),   # z
                pl.BlockSpec((tile_b, num_classes), lambda i: (i, 0)),  # labels
                pl.BlockSpec((latent_dim, hid), const, pipeline_mode=resident),
                pl.BlockSpec((num_classes, hid), const, pipeline_mode=resident),
                pl.BlockSpec((1, hid), const, pipeline_mode=resident),
                pl.BlockSpec((hid, out_dim), const, pipeline_mode=resident),
                pl.BlockSpec((1, out_dim), const, pipeline_mode=resident),
            ],
            out_specs=pl.BlockSpec((tile_b, out_dim), lambda i: (i, 0)),
        ),
        compiler_params=pltpu.CompilerParams(
            dimension_semantics=("parallel",),
            vmem_limit_bytes=vmem_limit),
    )(z, class_labels, w1z, w1c, b1r, w2c, b2r)
    return out


def init_params(key, latent_dim, num_classes, hidden_dim, output_dim,
                dtype=jnp.float32):
    """Deterministic nn.Linear-style init (uniform(-1/sqrt(fan_in), 1/sqrt(fan_in)))."""
    ks = jax.random.split(key, 4)
    in_dim = latent_dim + num_classes

    def linear(kw, kb, fan_in, fan_out):
        bound = 1.0 / jnp.sqrt(fan_in)
        # stored pre-transposed: (fan_in, fan_out) so the kernel does x @ W
        w = jax.random.uniform(kw, (fan_in, fan_out), dtype, -bound, bound)
        b = jax.random.uniform(kb, (fan_out,), dtype, -bound, bound)
        return w, b

    w1, b1 = linear(ks[0], ks[1], in_dim, hidden_dim)
    w2, b2 = linear(ks[2], ks[3], hidden_dim, output_dim)
    return (w1, b1, w2, b2)


def reference_forward(z, class_labels, params):
    w1, b1, w2, b2 = params
    x = jnp.concatenate([z, class_labels], axis=-1)
    h = jnp.maximum(x @ w1 + b1[None, :], 0.0)
    return h @ w2 + b2[None, :]


if __name__ == "__main__":
    # Small shapes consistent with the module.
    B, latent_dim, num_classes, hidden_dim, output_dim = 8, 16, 4, 32, 64

    key = jax.random.PRNGKey(0)
    k_z, k_c, k_p = jax.random.split(key, 3)
    z = jax.random.normal(k_z, (B, latent_dim), dtype=jnp.float32)
    labels = jax.random.randint(k_c, (B,), 0, num_classes)
    class_labels = jax.nn.one_hot(labels, num_classes, dtype=jnp.float32)
    params = init_params(k_p, latent_dim, num_classes, hidden_dim, output_dim)

    out = jax.block_until_ready(decoder_forward(z, class_labels, params))
    ref = reference_forward(z, class_labels, params)
    assert out.shape == (B, output_dim)
    # bf16 MXU operands with f32 accumulation -> few e-3 relative error vs f32.
    assert jnp.allclose(out, ref, atol=5e-2, rtol=5e-2)

    # Multi-tile / megacore-split path (grid > 1 with a partial last block).
    B2 = 100
    k_z2, k_c2 = jax.random.split(jax.random.PRNGKey(1), 2)
    z2 = jax.random.normal(k_z2, (B2, latent_dim), dtype=jnp.float32)
    labels2 = jax.random.randint(k_c2, (B2,), 0, num_classes)
    class_labels2 = jax.nn.one_hot(labels2, num_classes, dtype=jnp.float32)
    out2 = jax.block_until_ready(decoder_forward(z2, class_labels2, params))
    ref2 = reference_forward(z2, class_labels2, params)
    assert out2.shape == (B2, output_dim)
    assert jnp.allclose(out2, ref2, atol=5e-2, rtol=5e-2)

    print("KERNEL_OK")
</pallas_src>

<mosaic_0001>
module attributes {stable_mosaic.version = 11 : i64} {
  func.func @_decoder_kernel(%arg0: i32, %arg1: memref<8x16xf32, #tpu.memory_space<vmem>>, %arg2: memref<8x4xf32, #tpu.memory_space<vmem>>, %arg3: memref<16x32xbf16, #tpu.memory_space<vmem>>, %arg4: memref<4x32xbf16, #tpu.memory_space<vmem>>, %arg5: memref<1x32xf32, #tpu.memory_space<vmem>>, %arg6: memref<32x64xbf16, #tpu.memory_space<vmem>>, %arg7: memref<1x64xf32, #tpu.memory_space<vmem>>, %arg8: memref<8x64xf32, #tpu.memory_space<vmem>>) attributes {dimension_semantics = [#tpu.dimension_semantics<parallel>], iteration_bounds = array<i64: 1>, scalar_prefetch = 0 : i64, scratch_operands = 0 : i64, tpu.core_type = #tpu.core_type<tc>, window_params = [{transform_indices = @transform_0, window_bounds = array<i64: 8, 16>}, {transform_indices = @transform_1, window_bounds = array<i64: 8, 4>}, {pipeline_mode = #tpu.pipeline_mode<synchronous>, transform_indices = @transform_2, window_bounds = array<i64: 16, 32>}, {pipeline_mode = #tpu.pipeline_mode<synchronous>, transform_indices = @transform_3, window_bounds = array<i64: 4, 32>}, {pipeline_mode = #tpu.pipeline_mode<synchronous>, transform_indices = @transform_4, window_bounds = array<i64: 1, 32>}, {pipeline_mode = #tpu.pipeline_mode<synchronous>, transform_indices = @transform_5, window_bounds = array<i64: 32, 64>}, {pipeline_mode = #tpu.pipeline_mode<synchronous>, transform_indices = @transform_6, window_bounds = array<i64: 1, 64>}, {transform_indices = @transform_7, window_bounds = array<i64: 8, 64>}]} {
    %c0 = arith.constant 0 : index
    %c0_0 = arith.constant 0 : index
    %0 = vector.load %arg1[%c0, %c0_0] : memref<8x16xf32, #tpu.memory_space<vmem>>, vector<8x16xf32>
    %1 = arith.truncf %0 : vector<8x16xf32> to vector<8x16xbf16>
    %c0_1 = arith.constant 0 : index
    %c0_2 = arith.constant 0 : index
    %2 = vector.load %arg3[%c0_1, %c0_2] : memref<16x32xbf16, #tpu.memory_space<vmem>>, vector<16x32xbf16>
    %cst = arith.constant dense<0.000000e+00> : vector<8x32xf32>
    %3 = tpu.matmul %1, %2, %cst {dimension_numbers = #tpu.dot_dimension_numbers<[1], [0], [0], [1], [0, 0, 1, 1], [], []>} : vector<8x16xbf16>, vector<16x32xbf16>, vector<8x32xf32> -> vector<8x32xf32>
    %c0_3 = arith.constant 0 : index
    %c0_4 = arith.constant 0 : index
    %4 = vector.load %arg2[%c0_3, %c0_4] : memref<8x4xf32, #tpu.memory_space<vmem>>, vector<8x4xf32>
    %5 = arith.truncf %4 : vector<8x4xf32> to vector<8x4xbf16>
    %c0_5 = arith.constant 0 : index
    %c0_6 = arith.constant 0 : index
    %6 = vector.load %arg4[%c0_5, %c0_6] : memref<4x32xbf16, #tpu.memory_space<vmem>>, vector<4x32xbf16>
    %cst_7 = arith.constant dense<0.000000e+00> : vector<8x32xf32>
    %7 = tpu.matmul %5, %6, %cst_7 {dimension_numbers = #tpu.dot_dimension_numbers<[1], [0], [0], [1], [0, 0, 1, 1], [], []>} : vector<8x4xbf16>, vector<4x32xbf16>, vector<8x32xf32> -> vector<8x32xf32>
    %8 = arith.addf %3, %7 : vector<8x32xf32>
    %c0_8 = arith.constant 0 : index
    %c0_9 = arith.constant 0 : index
    %9 = vector.load %arg5[%c0_8, %c0_9] : memref<1x32xf32, #tpu.memory_space<vmem>>, vector<1x32xf32>
    %10 = vector.broadcast %9 : vector<1x32xf32> to vector<8x32xf32>
    %11 = arith.addf %8, %10 : vector<8x32xf32>
    %cst_10 = arith.constant 0.000000e+00 : f32
    %12 = vector.broadcast %cst_10 : f32 to vector<8x32xf32>
    %13 = arith.maximumf %11, %12 : vector<8x32xf32>
    %14 = arith.truncf %13 : vector<8x32xf32> to vector<8x32xbf16>
    %c0_11 = arith.constant 0 : index
    %c0_12 = arith.constant 0 : index
    %15 = vector.load %arg6[%c0_11, %c0_12] : memref<32x64xbf16, #tpu.memory_space<vmem>>, vector<32x64xbf16>
    %cst_13 = arith.constant dense<0.000000e+00> : vector<8x64xf32>
    %16 = tpu.matmul %14, %15, %cst_13 {dimension_numbers = #tpu.dot_dimension_numbers<[1], [0], [0], [1], [0, 0, 1, 1], [], []>} : vector<8x32xbf16>, vector<32x64xbf16>, vector<8x64xf32> -> vector<8x64xf32>
    %c0_14 = arith.constant 0 : index
    %c0_15 = arith.constant 0 : index
    %17 = vector.load %arg7[%c0_14, %c0_15] : memref<1x64xf32, #tpu.memory_space<vmem>>, vector<1x64xf32>
    %18 = vector.broadcast %17 : vector<1x64xf32> to vector<8x64xf32>
    %19 = arith.addf %16, %18 : vector<8x64xf32>
    %c0_16 = arith.constant 0 : index
    %c0_17 = arith.constant 0 : index
    %20 = vector.load %arg8[%c0_16, %c0_17] : memref<8x64xf32, #tpu.memory_space<vmem>>, vector<8x64xf32>
    tpu.vector_store %arg8[%c0_16, %c0_17], %19 {strides = array<i32>} : memref<8x64xf32, #tpu.memory_space<vmem>>, vector<8x64xf32>,
    return
  }
  func.func @transform_0(%arg0: i32) -> (i32, i32) {
    %c0_i32 = arith.constant 0 : i32
    %c0_i32_0 = arith.constant 0 : i32
    return %arg0, %c0_i32 : i32, i32
  }
  func.func @transform_1(%arg0: i32) -> (i32, i32) {
    %c0_i32 = arith.constant 0 : i32
    %c0_i32_0 = arith.constant 0 : i32
    return %arg0, %c0_i32 : i32, i32
  }
  func.func @transform_2(%arg0: i32) -> (i32, i32) {
    %c0_i32 = arith.constant 0 : i32
    %c0_i32_0 = arith.constant 0 : i32
    %c0_i32_1 = arith.constant 0 : i32
    return %c0_i32, %c0_i32_0 : i32, i32
  }
  func.func @transform_3(%arg0: i32) -> (i32, i32) {
    %c0_i32 = arith.constant 0 : i32
    %c0_i32_0 = arith.constant 0 : i32
    %c0_i32_1 = arith.constant 0 : i32
    return %c0_i32, %c0_i32_0 : i32, i32
  }
  func.func @transform_4(%arg0: i32) -> (i32, i32) {
    %c0_i32 = arith.constant 0 : i32
    %c0_i32_0 = arith.constant 0 : i32
    %c0_i32_1 = arith.constant 0 : i32
    return %c0_i32, %c0_i32_0 : i32, i32
  }
  func.func @transform_5(%arg0: i32) -> (i32, i32) {
    %c0_i32 = arith.constant 0 : i32
    %c0_i32_0 = arith.constant 0 : i32
    %c0_i32_1 = arith.constant 0 : i32
    return %c0_i32, %c0_i32_0 : i32, i32
  }
  func.func @transform_6(%arg0: i32) -> (i32, i32) {
    %c0_i32 = arith.constant 0 : i32
    %c0_i32_0 = arith.constant 0 : i32
    %c0_i32_1 = arith.constant 0 : i32
    return %c0_i32, %c0_i32_0 : i32, i32
  }
  func.func @transform_7(%arg0: i32) -> (i32, i32) {
    %c0_i32 = arith.constant 0 : i32
    %c0_i32_0 = arith.constant 0 : i32
    return %arg0, %c0_i32 : i32, i32
  }
}

</mosaic_0001>

<bundles_post_ra>
// kernel: tpu_custom_call.1
= control target key start
LH: loop header
LB: loop body
LE: loop exit
PB: predicated region body
PF: predicated region fallthrough
CT: control target
= control target key end

     0   :  { %12 = vsyncpa [#allocation3], 0  ;;  %s427_s0 = inlined_call_operand.vmem [shape: f32[8,16], index: 0, kind: input, shape index: {}]   ;;  %s428_s1 = inlined_call_operand.vmem [shape: f32[8,4], index: 1, kind: input, shape index: {}]   ;;  %s429_s2 = inlined_call_operand.hbm [shape: bf16[16,32], index: 2, kind: input, shape index: {}]   ;;  %s430_s3 = inlined_call_operand.vmem [shape: bf16[4,32], index: 3, kind: input, shape index: {}]   ;;  %s431_s4 = inlined_call_operand.vmem [shape: f32[1,32], index: 4, kind: input, shape index: {}]   ;;  %s432_s5 = inlined_call_operand.vmem [shape: bf16[32,64], index: 5, kind: input, shape index: {}]   ;;  %s433_s6 = inlined_call_operand.vmem [shape: f32[1,64], index: 6, kind: input, shape index: {}]   ;;  %s434_s7 = inlined_call_operand.hbm [shape: f32[8,64], index: 7, kind: output, shape index: {}]  }
   0x1   :  { %13 = vsyncpa [#allocation4], 0  ;;  %s333_s24 = smov [#allocation2]   ;;  %s285_s28 = scalar_lea.hbm %s429_s2, 128 }
   0x2   :  { %s23_s25 = sshll.u32 %s333_s24, 4  ;;  %p286_p0 = scmp.ne.s32.totalorder %s429_s2, %s285_s28  ;;  %s24_s25 = int_to_ptr.vmem [resolvable:$true] %s23_s25 }
   0x3   :  { %p289_p1 = scmp.lt.u32.totalorder %s285_s28, %s429_s2 }
   0x5   :  { %p291_p2 = pnand %p289_p1, %p286_p0 }
   0x7   :  { %294 = shalt.err (!%p291_p2)
}
   0x8   :  { %s295_s10 = scalar_lea.vmem %s24_s25, 128  ;;  %p300_p4 = scmp.lt.s32.totalorder %s24_s25, %s24_s25 }
   0x9   :  { %p296_p3 = scmp.ne.s32.totalorder %s24_s25, %s295_s10  ;;  %p301_p5 = scmp.lt.s32.totalorder %s295_s10, %s295_s10 }
   0xb   :  { %p302_p6 = por %p301_p5, %p300_p4 }
   0xd   :  { %p303_p7 = pnand %p302_p6, %p296_p3 }
   0xf   :  { %306 = shalt.err (!%p303_p7)
}
  0x10   :  { %s334_s11 = smov 64   ;;  %s335_s12 = smov 4  }
  0x11   :  { %29 = dma.hbm_to_vmem [thread:$0]  %s429_s2, 128, %s24_s25, [#allocation3], %s334_s11, %s334_s11, %s335_s12  }
  0x12   :  { %329 = dma.done.wait [#allocation3], 128  }
  0x13   :  { %330 = vsyncadd [#allocation3], 4294967168  ;;  %v336_v0 = vmov 0.0   ;;  %vm337_vm0 = vmmov 0   ;;  %vm53_vm1 = vcmask 1041408   ;;  %v282_v3 = vld [vmem:[#allocation2] sm:$0xff]  }
  0x14   :  { %256 = vmatprep.subr.bf16.mxu0 %v336_v0  ;;  %262 = vmatprep.subr.bf16.mxu1 %v336_v0  ;;  %v48_v1 = vld [vmem:[%s430_s3] sm:$0x3]  ;;  %vm49_vm2 = vcmask 31744   ;;  %vm103_vm3 = vcmask 130048   ;;  %v284_v9 = vld [vmem:[%s432_s5 + $0x8] sm:$0xff]   ;;  %vm180_vm4 = vcmask 261120  }
  0x15   :  { %258 = vmatprep.mubr.msk.bf16.mxu0 %vm337_vm0, %v336_v0  ;;  %264 = vmatprep.mubr.msk.bf16.mxu1 %vm337_vm0, %v336_v0  ;;  %v55_v2 = vsel %vm53_vm1, %v48_v1, 0  ;;  %v46_v4 = vld [vmem:[%s428_s1] sm:$0xff]  ;;  %s338_s24 = smov [#allocation5]   ;;  %vm224_vm5 = vcmask 523264  }
  0x16   :  { %v42_v5 = vld [vmem:[%s427_s0] sm:$0xff]  ;;  %257 = vmatpush3.bf16.msra.mxu0 %v55_v2  ;;  %v47_v6 = vpack.c.bf16 %v46_v4, %v46_v4  ;;  %263 = vmatpush3.bf16.msra.mxu1 %v282_v3  ;;  %s232_s25 = sshll.u32 %s338_s24, 4  ;;  %s233_s25 = int_to_ptr.vmem [resolvable:$true] %s232_s25 }
  0x17   :  { %v43_v7 = vpack.c.bf16 %v42_v5, %v42_v5  ;;  %268 = vmatprep.subr.bf16.mxu0 %v336_v0  ;;  %v283_v8 = vld [vmem:[%s432_s5] sm:$0xff]   ;;  %p312_p9 = scmp.lt.s32.totalorder %s233_s25, %s233_s25 }
  0x18   :  { %v244_v13 = vld [vmem:[%s431_s4] ss:$0 sm:$0xff]  ;;  %s307_s4 = scalar_lea.vmem %s233_s25, 128 }
  0x19   :  { %259 = vmatmul.mubr.msk.bf16.vlgmr.msra.gmra.mrb[0].mxu0 %vm49_vm2, %v47_v6  ;;  %265 = vmatmul.mubr.msk.bf16.vlgmr.msra.gmra.mrb[0].mxu1 %vm103_vm3, %v43_v7  ;;  %v245_v23 = vld [vmem:[%s433_s6] ss:$0 sm:$0xff]  ;;  %p308_p8 = scmp.ne.s32.totalorder %s233_s25, %s307_s4  ;;  %p313_p10 = scmp.lt.s32.totalorder %s307_s4, %s307_s4 }
  0x1a   :  { %272 = vmatprep.mubr.msk.bf16.mxu0 %vm337_vm0, %v336_v0  ;;  %269 = vmatpush3.bf16.msra.mxu0 %v283_v8 }
  0x1b   :  { %270 = vmatprep.subr.bf16.mxu0 %v336_v0  ;;  %p314_p11 = por %p313_p10, %p312_p9 }
  0x1d   :  { %p315_p12 = pnand %p314_p11, %p308_p8 }
  0x1e   :  { %271 = vmatpush3.bf16.msra.mxu0 %v284_v9 }
  0xec   :  { %v91_v10 = vpop.f32.mrb[0].mxu0  ;;  %v141_v12 = vpop.f32.mrb[0].mxu1 }
  0xed   :  { %v260_v11 = vpop.f32.mrb[1].mxu0  ;;  %v142_v14 = vadd.f32 %v141_v12, %v91_v10  ;;  %v266_v16 = vpop.f32.mrb[1].mxu1 }
  0xee   :  { %v94_v15 = vpop.f32.mrb[2].mxu0  ;;  %v144_v18 = vpop.f32.mrb[2].mxu1 }
  0xef   :  { %v261_v17 = vpop.f32.mrb[3].mxu0  ;;  %v154_v19 = vadd.f32 %v244_v13, %v142_v14  ;;  %v267_v20 = vpop.f32.mrb[3].mxu1 }
  0xf1   :  { %v155_v21 = vmax.f32 %v154_v19, 0.0 }
  0xf3   :  { %v156_v22 = vpack.c.bf16 %v155_v21, %v155_v21 }
  0xf5   :  { %273 = vmatmul.mubr.msk.bf16.vlgmr.msra.gmra.mrb[4].mxu0 %vm180_vm4, %v156_v22 }
 0x1c8   :  { %v218_v24 = vpop.f32.mrb[4].mxu0 }
 0x1c9   :  { %v219_v25 = vadd.f32 %v245_v23, %v218_v24  ;;  %v274_v26 = vpop.f32.mrb[5].mxu0 }
 0x1ca   :  { %v221_v27 = vpop.f32.mrb[6].mxu0 }
 0x1cb   :  { %v275_v28 = vpop.f32.mrb[7].mxu0  ;;  %225 = vst.msk [vmem:[#allocation5] sm:$0xff] %vm224_vm5, %v219_v25 }
 0x1cc   :  { %318 = shalt.err (!%p315_p12)
}
 0x1cd   :  { %s319_s6 = scalar_lea.hbm %s434_s7, 128 }
 0x1ce   :  { %p320_p13 = scmp.ne.s32.totalorder %s434_s7, %s319_s6  ;;  %p323_p0 = scmp.lt.u32.totalorder %s319_s6, %s434_s7 }
 0x1d0   :  { %p325_p1 = pnand %p323_p0, %p320_p13 }
 0x1d2   :  { %328 = shalt.err (!%p325_p1)
}
 0x1d3   :  { %235 = dma.vmem_to_hbm [thread:$0]  %s233_s25, 128, %s434_s7, [#allocation4]  }
 0x1d4   :  { %331 = dma.done.wait [#allocation4], 128  }
 0x1d5   :  { %332 = vsyncadd [#allocation4], 4294967168 }
 0x1d6   :  { %239 = vsyncpa [#allocation3], 1 }
 0x1d7   :  { %240 = vsyncpa [#allocation4], 1 }

</bundles_post_ra>
